<compile_context>
chip_gen: v6e
topology: v6e:2x2x1
jax: 0.10.0
libtpu: 0.0.40
codegen_flags: <defaults>
</compile_context>

<pallas_src>
import math
import jax
import jax.numpy as jnp
from jax.experimental import pallas as pl
from jax.experimental.pallas import tpu as pltpu


def _round_up(x, m):
    return (x + m - 1) // m * m


# Row-group size of theta^T produced per grid step of kernel 1.  16 keeps the
# bf16 output blocks sublane-dense ((16,128) native bf16 tile).
_TK = 16


def _pad_dims(in_features, out_features):
    """Padded (K_pad, N_pad) layout shared by both kernels."""
    if in_features <= 512:
        k_pad = _round_up(in_features, _TK)      # used as the full K tile
    else:
        k_pad = _round_up(in_features, 128)      # tiled by 128/256/512 below
    n_pad = _round_up(out_features, 128)
    return k_pad, n_pad


def _choose_basis_chunk(nbx, n_pad, budget_bytes=12 << 20):
    """Rows of the (expanded) basis streamed per step (bf16, double-buffered)."""
    rows = budget_bytes // (2 * 2 * n_pad)       # 2 buffers * 2 B/elem
    rows = max(128, (rows // 128) * 128)         # lane-dense LHS chunks
    return min(rows, _round_up(nbx, 128))


# ---------------------------------------------------------------------------
# Kernel 1: theta^T generation.
#   thetaT[g*TK + k, n] = sum_b alpha[b] * W[b, n, g*TK + k]
# realised as a dense 2D matmul:
#   A_expand (TK, nbx) @ wt_group_g (nbx, N_pad) -> (TK, N_pad)
# where A_expand[k, b*TK + j] = alpha[b] * (j == k) and wt_group_g row
# (b*TK + j) holds basis b's theta^T row g*TK + j.  Basis chunks are streamed
# (reduction axis last) and accumulated in f32; output is stored as bf16.
# ---------------------------------------------------------------------------
def _theta_kernel(a_ref, wt_ref, o_ref, acc_ref):
    c = pl.program_id(1)

    @pl.when(c == 0)
    def _():
        acc_ref[...] = jnp.zeros_like(acc_ref)

    acc_ref[...] += jnp.dot(
        a_ref[...],                               # f32 (alpha kept full precision)
        wt_ref[...].astype(jnp.float32),          # bf16 basis chunk -> f32
        preferred_element_type=jnp.float32,
    )

    @pl.when(c == pl.num_programs(1) - 1)
    def _():
        o_ref[...] = acc_ref[...].astype(o_ref.dtype)


def gen_theta_T(alpha, wt_rows, dims):
    """Returns theta^T already padded: (K_pad, N_pad), bfloat16."""
    tk_rows = dims["TK"]
    g_groups = dims["G"]
    k_pad, n_pad = dims["K_pad"], dims["N_pad"]
    nbx, nbx_pad, chunk = dims["nbx"], dims["nbx_pad"], dims["chunk"]
    num_chunks = nbx_pad // chunk
    num_basis = alpha.shape[0]

    # Tiny block-diagonal expansion of alpha (f32):
    #   A[k, b*TK + j] = alpha[b] * (j == k)
    eye = jnp.eye(tk_rows, dtype=jnp.float32)
    a_exp = (alpha[None, :, None] * eye[:, None, :]).reshape(
        tk_rows, num_basis * tk_rows)
    a_exp = jnp.pad(a_exp, ((0, 0), (0, nbx_pad - nbx)))

    return pl.pallas_call(
        _theta_kernel,
        out_shape=jax.ShapeDtypeStruct((k_pad, n_pad), jnp.bfloat16),
        grid=(g_groups, num_chunks),                  # reduction axis last
        in_specs=[
            pl.BlockSpec((tk_rows, chunk), lambda g, c: (0, c)),
            pl.BlockSpec((chunk, n_pad),
                         lambda g, c: (g * num_chunks + c, 0)),
        ],
        out_specs=pl.BlockSpec((tk_rows, n_pad), lambda g, c: (g, 0)),
        scratch_shapes=[pltpu.VMEM((tk_rows, n_pad), jnp.float32)],
        compiler_params=pltpu.CompilerParams(
            dimension_semantics=("parallel", "arbitrary"),
            vmem_limit_bytes=48 << 20,                # safe on v7x (64 MiB VMEM)
        ),
    )(a_exp, wt_rows)


# ---------------------------------------------------------------------------
# Kernel 2: y = x @ theta^T + bias, bf16 operands on the MXU, f32 accumulation
# directly into the VMEM-resident output block (its index is constant over k).
# ---------------------------------------------------------------------------
def _linear_kernel(x_ref, w_ref, b_ref, o_ref):
    k = pl.program_id(2)

    @pl.when(k == 0)
    def _():
        o_ref[...] = jnp.zeros_like(o_ref)

    o_ref[...] += jnp.dot(
        x_ref[...], w_ref[...], preferred_element_type=jnp.float32)

    @pl.when(k == pl.num_programs(2) - 1)
    def _():
        o_ref[...] += b_ref[...]


def nola_linear_apply(x, thetaT_pad, bias_pad, out_features):
    batch, seq, in_features = x.shape
    k_pad, n_pad = thetaT_pad.shape
    m = batch * seq

    # Lane-dense, MXU-filling tiles; caps keep the double-buffered footprint
    # at a few MiB (fits v7x's 64 MiB while still large enough for v5e/v6e).
    tm = min(256, _round_up(m, _TK))
    m_pad = _round_up(m, tm)
    tk = k_pad if k_pad <= 512 else (
        512 if k_pad % 512 == 0 else (256 if k_pad % 256 == 0 else 128))
    tn = n_pad if n_pad <= 512 else (
        512 if n_pad % 512 == 0 else (256 if n_pad % 256 == 0 else 128))

    # bf16 cast (review opt #1); pad only when the shapes don't already divide.
    x2 = x.reshape(m, in_features).astype(jnp.bfloat16)
    if m_pad != m or k_pad != in_features:
        x2 = jnp.pad(x2, ((0, m_pad - m), (0, k_pad - in_features)))

    out = pl.pallas_call(
        _linear_kernel,
        out_shape=jax.ShapeDtypeStruct((m_pad, n_pad), jnp.float32),
        grid=(m_pad // tm, n_pad // tn, k_pad // tk),   # reduction axis last
        in_specs=[
            pl.BlockSpec((tm, tk), lambda i, j, k: (i, k)),
            pl.BlockSpec((tk, tn), lambda i, j, k: (k, j)),
            pl.BlockSpec((1, tn), lambda i, j, k: (0, j)),
        ],
        out_specs=pl.BlockSpec((tm, tn), lambda i, j, k: (i, j)),
        compiler_params=pltpu.CompilerParams(
            dimension_semantics=("parallel", "parallel", "arbitrary"),
            vmem_limit_bytes=48 << 20,
        ),
    )(x2, thetaT_pad, bias_pad)

    return out[:m, :out_features].reshape(batch, seq, out_features)


# ---------------------------------------------------------------------------
# Parameter construction (mirrors the torch module's __init__; the basis is
# drawn once with a JAX PRNG and pre-permuted into the kernel-1 layout).
# ---------------------------------------------------------------------------
def init_nola_linear(key, in_features, out_features, param_ratio=0.25):
    num_basis = int(in_features * out_features * param_ratio)
    k_alpha, k_w, k_bias = jax.random.split(key, 3)

    # alpha = rand(num_basis) * 0.1 - 0.05   (kept f32)
    alpha = jax.random.uniform(k_alpha, (num_basis,), jnp.float32) * 0.1 - 0.05

    # W: kaiming_uniform_(a=sqrt(5)) on (num_basis, out, in) -> bound=1/sqrt(out*in)
    w_bound = 1.0 / math.sqrt(out_features * in_features)
    W = jax.random.uniform(
        k_w, (num_basis, out_features, in_features), jnp.float32,
        minval=-w_bound, maxval=w_bound)

    # bias ~ U(-1/sqrt(in), 1/sqrt(in))
    b_bound = 1.0 / math.sqrt(in_features)
    bias = jax.random.uniform(
        k_bias, (out_features,), jnp.float32, minval=-b_bound, maxval=b_bound)

    # --- one-time layout of the basis for kernel 1 (bf16, padded, grouped) ---
    k_pad, n_pad = _pad_dims(in_features, out_features)
    g_groups = k_pad // _TK
    nbx = num_basis * _TK
    chunk = _choose_basis_chunk(nbx, n_pad)
    nbx_pad = _round_up(nbx, chunk)

    wt3 = jnp.transpose(W, (0, 2, 1))                     # (nb, in, out) = theta^T basis
    wt3 = jnp.pad(wt3, ((0, 0),
                        (0, k_pad - in_features),
                        (0, n_pad - out_features)))        # (nb, K_pad, N_pad)
    wg = wt3.reshape(num_basis, g_groups, _TK, n_pad)      # [b, g, j, n]
    wg = jnp.transpose(wg, (1, 0, 2, 3))                   # [g, b, j, n]
    wg = wg.reshape(g_groups, nbx, n_pad)                  # row r = b*TK + j
    wg = jnp.pad(wg, ((0, 0), (0, nbx_pad - nbx), (0, 0)))
    wt_rows = wg.reshape(g_groups * nbx_pad, n_pad).astype(jnp.bfloat16)

    bias_pad = jnp.pad(bias, (0, n_pad - out_features)).reshape(1, n_pad)

    dims = dict(in_features=in_features, out_features=out_features,
                K_pad=k_pad, N_pad=n_pad, TK=_TK, G=g_groups,
                nbx=nbx, nbx_pad=nbx_pad, chunk=chunk)
    return dict(alpha=alpha, W=W, bias=bias,
                wt_rows=wt_rows, bias_pad=bias_pad, dims=dims)


def nola_linear_forward(x, params):
    # theta^T depends only on (alpha, basis); when those are frozen it can be
    # cached across calls instead of being regenerated every forward.
    thetaT = gen_theta_T(params["alpha"], params["wt_rows"], params["dims"])
    return nola_linear_apply(x, thetaT, params["bias_pad"],
                             params["dims"]["out_features"])


if __name__ == "__main__":
    IN_FEATURES = 32
    OUT_FEATURES = 16
    PARAM_RATIO = 0.25        # -> num_basis = 128
    B, S = 2, 8

    key = jax.random.PRNGKey(0)
    k_param, k_x = jax.random.split(key)

    params = init_nola_linear(k_param, IN_FEATURES, OUT_FEATURES, PARAM_RATIO)
    x = jax.random.normal(k_x, (B, S, IN_FEATURES), jnp.float32)

    y = nola_linear_forward(x, params)
    y = jax.block_until_ready(y)

    # Pure-JAX reference using the same reduced-precision inputs the kernels
    # consume (bf16 basis, bf16 x / theta^T in the main matmul, f32 alpha and
    # f32 accumulation).
    w_b = params["W"].astype(jnp.bfloat16).astype(jnp.float32)
    theta_ref = jnp.einsum("b,boi->oi", params["alpha"], w_b)          # (out, in)
    thetaT_b = theta_ref.T.astype(jnp.bfloat16).astype(jnp.float32)    # (in, out)
    x_b = x.astype(jnp.bfloat16).astype(jnp.float32)
    y_ref = jnp.einsum("bsi,io->bso", x_b, thetaT_b) + params["bias"]

    assert y.shape == (B, S, OUT_FEATURES)
    max_err = float(jnp.max(jnp.abs(y - y_ref)))
    assert jnp.allclose(y, y_ref, atol=2e-3, rtol=2e-3), max_err

    print("KERNEL_OK")
</pallas_src>

<mosaic_0001>
module attributes {stable_mosaic.version = 11 : i64} {
  func.func @_theta_kernel(%arg0: i32, %arg1: i32, %arg2: memref<16x2048xf32, #tpu.memory_space<vmem>>, %arg3: memref<2048x128xbf16, #tpu.memory_space<vmem>>, %arg4: memref<16x128xbf16, #tpu.memory_space<vmem>>, %arg5: memref<16x128xf32, #tpu.memory_space<vmem>>) attributes {dimension_semantics = [#tpu.dimension_semantics<parallel>, #tpu.dimension_semantics<arbitrary>], iteration_bounds = array<i64: 2, 1>, scalar_prefetch = 0 : i64, scratch_operands = 1 : i64, tpu.core_type = #tpu.core_type<tc>, window_params = [{transform_indices = @transform_0, window_bounds = array<i64: 16, 2048>}, {transform_indices = @transform_1, window_bounds = array<i64: 2048, 128>}, {transform_indices = @transform_2, window_bounds = array<i64: 16, 128>}]} {
    %c0_i32 = arith.constant 0 : i32
    %0 = arith.cmpi eq, %arg1, %c0_i32 : i32
    %1 = arith.extui %0 : i1 to i32
    %c0_i32_0 = arith.constant 0 : i32
    %2 = arith.cmpi ne, %1, %c0_i32_0 : i32
    scf.if %2 {
      %cst_10 = arith.constant 0.000000e+00 : f32
      %13 = vector.broadcast %cst_10 : f32 to vector<16x128xf32>
      %c0_11 = arith.constant 0 : index
      %c0_12 = arith.constant 0 : index
      %14 = vector.load %arg5[%c0_11, %c0_12] : memref<16x128xf32, #tpu.memory_space<vmem>>, vector<16x128xf32>
      tpu.vector_store %arg5[%c0_11, %c0_12], %13 {strides = array<i32>} : memref<16x128xf32, #tpu.memory_space<vmem>>, vector<16x128xf32>,
    } else {
    }
    %c0 = arith.constant 0 : index
    %c0_1 = arith.constant 0 : index
    %3 = vector.load %arg5[%c0, %c0_1] : memref<16x128xf32, #tpu.memory_space<vmem>>, vector<16x128xf32>
    %c0_2 = arith.constant 0 : index
    %c0_3 = arith.constant 0 : index
    %4 = vector.load %arg2[%c0_2, %c0_3] : memref<16x2048xf32, #tpu.memory_space<vmem>>, vector<16x2048xf32>
    %c0_4 = arith.constant 0 : index
    %c0_5 = arith.constant 0 : index
    %5 = vector.load %arg3[%c0_4, %c0_5] : memref<2048x128xbf16, #tpu.memory_space<vmem>>, vector<2048x128xbf16>
    %6 = arith.extf %5 : vector<2048x128xbf16> to vector<2048x128xf32>
    %cst = arith.constant dense<0.000000e+00> : vector<16x128xf32>
    %7 = tpu.matmul %4, %6, %cst {dimension_numbers = #tpu.dot_dimension_numbers<[1], [0], [0], [1], [0, 0, 1, 1], [], []>} : vector<16x2048xf32>, vector<2048x128xf32>, vector<16x128xf32> -> vector<16x128xf32>
    %8 = arith.addf %3, %7 : vector<16x128xf32>
    %c0_6 = arith.constant 0 : index
    %c0_7 = arith.constant 0 : index
    %9 = vector.load %arg5[%c0_6, %c0_7] : memref<16x128xf32, #tpu.memory_space<vmem>>, vector<16x128xf32>
    tpu.vector_store %arg5[%c0_6, %c0_7], %8 {strides = array<i32>} : memref<16x128xf32, #tpu.memory_space<vmem>>, vector<16x128xf32>,
    %c0_i32_8 = arith.constant 0 : i32
    %10 = arith.cmpi eq, %arg1, %c0_i32_8 : i32
    %11 = arith.extui %10 : i1 to i32
    %c0_i32_9 = arith.constant 0 : i32
    %12 = arith.cmpi ne, %11, %c0_i32_9 : i32
    scf.if %12 {
      %c0_10 = arith.constant 0 : index
      %c0_11 = arith.constant 0 : index
      %13 = vector.load %arg5[%c0_10, %c0_11] : memref<16x128xf32, #tpu.memory_space<vmem>>, vector<16x128xf32>
      %14 = arith.truncf %13 : vector<16x128xf32> to vector<16x128xbf16>
      %c0_12 = arith.constant 0 : index
      %c0_13 = arith.constant 0 : index
      %15 = vector.load %arg4[%c0_12, %c0_13] : memref<16x128xbf16, #tpu.memory_space<vmem>>, vector<16x128xbf16>
      tpu.vector_store %arg4[%c0_12, %c0_13], %14 {strides = array<i32>} : memref<16x128xbf16, #tpu.memory_space<vmem>>, vector<16x128xbf16>,
    } else {
    }
    return
  }
  func.func @transform_0(%arg0: i32, %arg1: i32) -> (i32, i32) {
    %c0_i32 = arith.constant 0 : i32
    %c0_i32_0 = arith.constant 0 : i32
    return %c0_i32, %arg1 : i32, i32
  }
  func.func @transform_1(%arg0: i32, %arg1: i32) -> (i32, i32) {
    %c1_i32 = arith.constant 1 : i32
    %0 = arith.muli %arg0, %c1_i32 : i32
    %1 = arith.addi %0, %arg1 : i32
    %c0_i32 = arith.constant 0 : i32
    %c0_i32_0 = arith.constant 0 : i32
    return %1, %c0_i32 : i32, i32
  }
  func.func @transform_2(%arg0: i32, %arg1: i32) -> (i32, i32) {
    %c0_i32 = arith.constant 0 : i32
    %c0_i32_0 = arith.constant 0 : i32
    return %arg0, %c0_i32 : i32, i32
  }
}

</mosaic_0001>

<bundles_post_ra>
// kernel: tpu_custom_call.1
= control target key start
LH: loop header
LB: loop body
LE: loop exit
PB: predicated region body
PF: predicated region fallthrough
CT: control target
= control target key end

     0   :  { %7 = vsyncpa [#allocation4], 0  ;;  %s3011_s0 = inlined_call_operand.hbm [shape: f32[16,2048], index: 0, kind: input, shape index: {}]   ;;  %s3012_s1 = inlined_call_operand.hbm [shape: bf16[4096,128], index: 1, kind: input, shape index: {}]   ;;  %s3013_s2 = inlined_call_operand.hbm [shape: bf16[32,128], index: 2, kind: output, shape index: {}]  }
   0x1   :  { %8 = vsyncpa [#allocation7], 0 }
   0x2   :  { %10 = vsyncpa [#allocation7 + $0x1], 0 }
   0x3   :  { %11 = vsyncpa [#allocation5], 0 }
   0x4   :  { %13 = vsyncpa [#allocation5 + $0x1], 0  ;;  %s2699_s9 = smov 0   ;;  %s2701_s10 = smov 0  }
   0x5   :  { %s2703_s11 = smov 0   ;;  %s2705_s12 = smov 0  }
   0x6   :  { %s2707_s13 = smov 0   ;;  %s2709_s14 = smov 0  }
   0x7 LB: > { %s1485_s15 = sadd.s32 4294967295, %s2673_s14   ;;  %s1486_s16 = sadd.s32 4294967294, %s2673_s14   ;;  %s2673_s14 = sphi %s2709_s14, %s19_s14   ;;  %s2669_s13 = sphi %s2707_s13, %s3031_s13   ;;  %s2665_s12 = sphi %s2705_s12, %s3030_s12   ;;  %s2661_s11 = sphi %s2703_s11, %s3029_s11   ;;  %s2657_s10 = sphi %s2701_s10, %s3028_s10   ;;  %s2653_s9 = sphi %s2699_s9, %s3027_s9  }
   0x8   : > { %p79_p0 = scmp.ne.s32.totalorder %s2657_s10, %s2653_s9  ;;  %p2733_p1 = scmp.eq.s32.totalorder %s1485_s15, 0 }
   0x9   : > { %p2737_p2 = scmp.eq.s32.totalorder %s1485_s15, 1  ;;  %p109_p3 = scmp.eq.s32.totalorder %s1486_s16, 1 }
   0xa   : > { %p2743_p4 = por %p2733_p1, %p79_p0  ;;  %p1487_p5 = scmp.ge.s32.totalorder %s2673_s14, 1 }
   0xb   : > { %p2748_p6 = por %p109_p3, %p79_p0  ;;  %p116_p7 = scmp.lt.s32.totalorder %s2673_s14, 3 }
   0xc   : > { %s3017_s19 = scalar_select %p2743_p4, 1, 0 }
   0xd   : > { %s3018_s20 = scalar_select %p2748_p6, 1, 0 }
   0xe   : > { %p2753_p8 = pnand %p1487_p5, %p116_p7  ;;  %s2675_s22 = smov [#allocation3]  }
   0xf   : > { %s131_s23 = sshll.u32 %s2675_s22, 4  ;;  %s31_s25 = sadd.s32 1, %s2669_s13  ;;  %s132_s23 = int_to_ptr.vmem [resolvable:$true] %s131_s23 }
  0x10   : > { %p2464_p9 = pneg %p2753_p8  ;;  %s2546_s26 = scalar_lea.vmem %s132_s23, 4096 }
  0x11   : > { %p2547_p13 = scmp.ne.s32.totalorder %s132_s23, %s2546_s26  ;;  %p2554_p5 = scmp.lt.s32.totalorder %s132_s23, %s132_s23 }
  0x12   : > { %p2762_p11 = pnand %p2464_p9, %p2733_p1  ;;  %p2555_p7 = scmp.lt.s32.totalorder %s2546_s26, %s2546_s26 }
  0x14   : > { %p2537_p12 = pneg %p2762_p11  ;;  %p2556_p6 = por %p2555_p7, %p2554_p5 }
  0x16   : > { %p2549_p0 = pnand %p2547_p13, %p2537_p12 }
  0x18   : > { %p2550_p3 = pneg %p2549_p0 }
  0x1a   : > { %p2557_p4 = pnand %p2556_p6, %p2550_p3 }
  0x1c   : > { %2560 = shalt.err (!%p2557_p4)
}
  0x1d   : > { %s2676_s27 = smov 2048   ;;  %s2677_s28 = smov 128  }
  0x1e   : > { %2467 = dma.hbm_to_vmem [thread:$0]  (!%p2762_p11), %s3011_s0, 4096, %s132_s23, [#allocation4], %s2676_s27, %s2676_s27, %s2677_s28  }
  0x1f   : > { %p33_p6 = scmp.ge.s32.totalorder %s31_s25, 2  ;;  %s66_s3 = sadd.s32 1, %s2661_s11 }
  0x20   : > { %p73_p4 = scmp.ne.s32.totalorder %s2661_s11, %s2657_s10  ;;  %p74_p9 = scmp.eq.s32.totalorder %s2673_s14, 0 }
  0x21   : > { %s3033_s25 = smov (%p33_p6, %s31_s25), 0  ;;  %p2477_p0 = scmp.lt.s32.totalorder %s2673_s14, 2 }
  0x22   : > { %p2780_p12 = por %p74_p9, %p73_p4  ;;  %p2786_p13 = por %p2737_p2, %p73_p4 }
  0x23   : > { %s63_s6 = ssub.s32 %s2669_s13, %s3033_s25  ;;  %s145_s7 = sand.u32 1, %s2661_s11  }
  0x24   : > { %p64_p11 = scmp.eq.s32.totalorder %s63_s6, 0  ;;  %s1490_s8 = sshll.u32 %s145_s7, 10 }
  0x25   : > { %s1504_s16 = sshll.u32 %s2669_s13, 14  ;;  %s149_s26 = scalar_lea.vmem [#allocation6], %s1490_s8 }
  0x26   : > { %s2795_s15 = scalar_select %p64_p11, %s2661_s11, %s66_s3  }
  0x27   : > { %s156_s24 = scalar_lea.hbm %s3012_s1, %s1504_s16  ;;  %s157_s27 = sshll.u32 %s149_s26, 4  ;;  %s158_s27 = int_to_ptr.vmem [resolvable:$true] %s157_s27 }
  0x28   : > { %p2803_p2 = pnand %p2477_p0, %p2780_p12  ;;  %s146_s28 = scalar_lea.sflag [#allocation7], %s145_s7 }
  0x29   : > { %s2574_s29 = scalar_lea.vmem %s158_s27, 16384  ;;  %s2678_s30 = smov [#allocation6]  }
  0x2a   : > { %p2563_p3 = pneg %p2803_p2  ;;  %p2575_p5 = scmp.ne.s32.totalorder %s158_s27, %s2574_s29 }
  0x2b   : > { %s2579_s3 = sshll.u32 %s2678_s30, 4  ;;  %s2580_s3 = int_to_ptr.vmem [resolvable:$false] %s2579_s3 }
  0x2c   : > { %p2577_p7 = pnand %p2575_p5, %p2563_p3  ;;  %s2581_s6 = scalar_lea.vmem %s2580_s3, 32768 }
  0x2d   : > { %p2582_p4 = scmp.lt.s32.totalorder %s158_s27, %s2580_s3  ;;  %p2583_p9 = scmp.lt.s32.totalorder %s2581_s6, %s2574_s29 }
  0x2e   : > { %p2578_p6 = pneg %p2577_p7 }
  0x2f   : > { %p2584_p11 = por %p2583_p9, %p2582_p4 }
  0x31   : > { %p2585_p10 = pnand %p2584_p11, %p2578_p6 }
  0x33   : > { %2588 = shalt.err (!%p2585_p10)
}
  0x34   : > { %s2679_s4 = smov 64   ;;  %s2680_s8 = smov 4  }
  0x35   : > { %2471 = dma.hbm_to_vmem [thread:$0]  (!%p2803_p2), %s156_s24, 16384, %s158_s27, %s146_s28, %s2679_s4, %s2679_s4, %s2680_s8  }
  0x36   : > { %169 = sbr.rel (%p2753_p8) target bundleno = 430 (0x1ae), region = 28 }
  0x3b   : > { %2640 = dma.done.wait (%p2733_p1), [#allocation4], 4096  }
  0x3c   : > { %2642 = vsyncadd (%p2733_p1), [#allocation4], 4294963200  ;;  %s2818_s7 = sand.u32 1, %s2657_s10   ;;  %p3024_p10 = scmp.ne.s32.totalorder %s3017_s19, 0 }
  0x3d   : > { %s1495_s16 = sshll.u32 %s2818_s7, 10  ;;  %s176_s22 = scalar_lea.sflag [#allocation7], %s2818_s7 }
  0x3e   : > { %s2822_s23 = scalar_lea.vmem [#allocation6], %s1495_s16 }
  0x3f   : > { %2644 = dma.done.wait (%p3024_p10), %s176_s22, 16384  }
  0x40   : > { %2646 = vsyncadd (%p3024_p10), %s176_s22, 4294950912  ;;  %v2039_v0 = vld [vmem:[%s2822_s23 + $0x78] sm:$0xff]   ;;  %v2038_v8 = vld [vmem:[%s2822_s23 + $0x70] sm:$0xff]   ;;  %s1496_s17 = sshll.u32 %s2818_s7, 3  ;;  %s1507_s19 = sshll.u32 %s2665_s12, 7 }
  0x41   : > { %v2055_v1 = vld [vmem:[%s2822_s23 + $0xf8] sm:$0xff]   ;;  %v1570_v3 = vunpack.c.l.bf16 %v2039_v0  ;;  %v1571_v4 = vunpack.c.h.bf16 %v2039_v0  ;;  %v2054_v9 = vld [vmem:[%s2822_s23 + $0xf0] sm:$0xff]   ;;  %v1567_v16 = vunpack.c.h.bf16 %v2038_v8  ;;  %v2037_v20 = vld [vmem:[%s2822_s23 + $0x68] sm:$0xff]   ;;  %v1566_v22 = vunpack.c.l.bf16 %v2038_v8  ;;  %s199_s21 = scalar_lea.vmem [#allocation8], %s1496_s17  ;;  %s2961_s18 = scalar_lea.hbm %s3013_s2, %s1507_s19 }
  0x42   : > { %v2031_v2 = vld [vmem:[%s2822_s23 + $0x38] sm:$0xff]   ;;  %v1634_v5 = vunpack.c.l.bf16 %v2055_v1  ;;  %v1635_v6 = vunpack.c.h.bf16 %v2055_v1  ;;  %v2030_v14 = vld [vmem:[%s2822_s23 + $0x30] sm:$0xff]   ;;  %v1631_v17 = vunpack.c.h.bf16 %v2054_v9  ;;  %v2053_v21 = vld [vmem:[%s2822_s23 + $0xe8] sm:$0xff]   ;;  %v1630_v23 = vunpack.c.l.bf16 %v2054_v9  ;;  %s1389_s24 = sshll.u32 %s199_s21, 4  ;;  %s1376_s28 = scalar_lea.sflag [#allocation5], %s2818_s7  ;;  %s2963_s24 = int_to_ptr.vmem [resolvable:$true] %s1389_s24 }
  0x43   : > { %v2047_v7 = vld [vmem:[%s2822_s23 + $0xb8] sm:$0xff]   ;;  %v1538_v10 = vunpack.c.l.bf16 %v2031_v2  ;;  %v1539_v11 = vunpack.c.h.bf16 %v2031_v2  ;;  %v2046_v15 = vld [vmem:[%s2822_s23 + $0xb0] sm:$0xff]   ;;  %2152 = vmatprep.subr.mxu0 %v1571_v4  ;;  %v1535_v18 = vunpack.c.h.bf16 %v2030_v14  ;;  %v2029_v24 = vld [vmem:[%s2822_s23 + $0x28] sm:$0xff]   ;;  %v1534_v26 = vunpack.c.l.bf16 %v2030_v14  ;;  %s2589_s29 = scalar_lea.vmem %s2963_s24, 128  ;;  %s2681_s12 = smov [#allocation8]  }
  0x44   : > { %v1602_v12 = vunpack.c.l.bf16 %v2047_v7  ;;  %v1603_v13 = vunpack.c.h.bf16 %v2047_v7  ;;  %2190 = vmatprep.subr.mxu1 %v1635_v6  ;;  %v1599_v19 = vunpack.c.h.bf16 %v2046_v15  ;;  %v2045_v25 = vld [vmem:[%s2822_s23 + $0xa8] sm:$0xff]   ;;  %v1598_v27 = vunpack.c.l.bf16 %v2046_v15  ;;  %v2036_v32 = vld [vmem:[%s2822_s23 + $0x60] sm:$0xff]   ;;  %v2035_v44 = vld [vmem:[%s2822_s23 + $0x58] sm:$0xff]   ;;  %p2590_p1 = scmp.ne.s32.totalorder %s2963_s24, %s2589_s29  ;;  %s2593_s30 = sshll.u32 %s2681_s12, 4  ;;  %s2594_s30 = int_to_ptr.vmem [resolvable:$false] %s2593_s30 }
  0x45   : > { %2153 = vmatpush3.msra.mxu0 %v1539_v11  ;;  %v1563_v28 = vunpack.c.h.bf16 %v2037_v20  ;;  %v1627_v29 = vunpack.c.h.bf16 %v2053_v21  ;;  %v1531_v30 = vunpack.c.h.bf16 %v2029_v24  ;;  %v1595_v31 = vunpack.c.h.bf16 %v2045_v25  ;;  %v2052_v33 = vld [vmem:[%s2822_s23 + $0xe0] sm:$0xff]   ;;  %v2051_v45 = vld [vmem:[%s2822_s23 + $0xd8] sm:$0xff]   ;;  %v2034_v56 = vld [vmem:[%s2822_s23 + $0x50] sm:$0xff]   ;;  %s2595_s3 = scalar_lea.vmem %s2594_s30, 256  ;;  %p2596_p0 = scmp.lt.s32.totalorder %s2963_s24, %s2594_s30 }
  0x46   : > { %2191 = vmatpush3.msra.mxu1 %v1603_v13  ;;  %2154 = vmatprep.subr.mxu0 %v1570_v3  ;;  %v1562_v34 = vunpack.c.l.bf16 %v2037_v20  ;;  %v1626_v35 = vunpack.c.l.bf16 %v2053_v21  ;;  %v2028_v36 = vld [vmem:[%s2822_s23 + $0x20] sm:$0xff]   ;;  %v1530_v38 = vunpack.c.l.bf16 %v2029_v24  ;;  %v1594_v39 = vunpack.c.l.bf16 %v2045_v25  ;;  %v2027_v48 = vld [vmem:[%s2822_s23 + $0x18] sm:$0xff]   ;;  %v2050_v57 = vld [vmem:[%s2822_s23 + $0xd0] sm:$0xff]   ;;  %p2591_p8 = pnand %p2590_p1, %p2786_p13  ;;  %p2597_p2 = scmp.lt.s32.totalorder %s2595_s3, %s2589_s29 }
  0x47   : > { %2192 = vmatprep.subr.mxu1 %v1634_v5  ;;  %2155 = vmatpush3.msra.mxu0 %v1538_v10  ;;  %v2044_v37 = vld [vmem:[%s2822_s23 + $0xa0] sm:$0xff]   ;;  %v1559_v40 = vunpack.c.h.bf16 %v2036_v32  ;;  %v1623_v41 = vunpack.c.h.bf16 %v2052_v33  ;;  %v1527_v42 = vunpack.c.h.bf16 %v2028_v36  ;;  %v1558_v46 = vunpack.c.l.bf16 %v2036_v32  ;;  %v2043_v49 = vld [vmem:[%s2822_s23 + $0x98] sm:$0xff]   ;;  %v2026_v60 = vld [vmem:[%s2822_s23 + $0x10] sm:$0xff]  }
  0x48   : > { %2193 = vmatpush3.msra.mxu1 %v1602_v12  ;;  %2156 = vmatprep.subr.mxu0 %v1567_v16  ;;  %v1591_v43 = vunpack.c.h.bf16 %v2044_v37  ;;  %v1622_v47 = vunpack.c.l.bf16 %v2052_v33  ;;  %v1526_v50 = vunpack.c.l.bf16 %v2028_v36  ;;  %v1590_v51 = vunpack.c.l.bf16 %v2044_v37  ;;  %v2042_v61 = vld [vmem:[%s2822_s23 + $0x90] sm:$0xff]   ;;  %v2033_v4 = vld [vmem:[%s2822_s23 + $0x48] sm:$0xff]   ;;  %v2032_v16 = vld [vmem:[%s2822_s23 + $0x40] sm:$0xff]   ;;  %p2592_p12 = pneg %p2591_p8  ;;  %p2598_p3 = por %p2597_p2, %p2596_p0 }
  0x49   : > { %2194 = vmatprep.subr.mxu1 %v1631_v17  ;;  %2157 = vmatpush3.msra.mxu0 %v1535_v18  ;;  %v1555_v52 = vunpack.c.h.bf16 %v2035_v44  ;;  %v1619_v53 = vunpack.c.h.bf16 %v2051_v45  ;;  %v1523_v54 = vunpack.c.h.bf16 %v2027_v48  ;;  %v1587_v55 = vunpack.c.h.bf16 %v2043_v49  ;;  %v2049_v5 = vld [vmem:[%s2822_s23 + $0xc8] sm:$0xff]   ;;  %v2048_v17 = vld [vmem:[%s2822_s23 + $0xc0] sm:$0xff]   ;;  %v2087_v32 = vld [vmem:[%s2822_s23 + $0x1f8] sm:$0xff]  }
  0x4a   : > { %2195 = vmatpush3.msra.mxu1 %v1599_v19  ;;  %2158 = vmatprep.subr.mxu0 %v1566_v22  ;;  %v1554_v58 = vunpack.c.l.bf16 %v2035_v44  ;;  %v1618_v59 = vunpack.c.l.bf16 %v2051_v45  ;;  %v1522_v62 = vunpack.c.l.bf16 %v2027_v48  ;;  %v1586_v63 = vunpack.c.l.bf16 %v2043_v49  ;;  %v2025_v8 = vld [vmem:[%s2822_s23 + $0x8] sm:$0xff]   ;;  %v1509_v20 = vld [vmem:[%s2822_s23] sm:$0xff]   ;;  %v2079_v36 = vld [vmem:[%s2822_s23 + $0x1b8] sm:$0xff]   ;;  %p2599_p5 = pnand %p2598_p3, %p2592_p12 }
  0x4b   : > { %2196 = vmatprep.subr.mxu1 %v1630_v23  ;;  %2159 = vmatpush3.msra.mxu0 %v1534_v26  ;;  %v1551_v0 = vunpack.c.h.bf16 %v2034_v56  ;;  %v1615_v1 = vunpack.c.h.bf16 %v2050_v57  ;;  %v1519_v2 = vunpack.c.h.bf16 %v2026_v60  ;;  %v1583_v3 = vunpack.c.h.bf16 %v2042_v61  ;;  %v2041_v9 = vld [vmem:[%s2822_s23 + $0x88] sm:$0xff]   ;;  %v2040_v21 = vld [vmem:[%s2822_s23 + $0x80] sm:$0xff]   ;;  %v215_v37 = vld [vmem:[#allocation3 + $0x18] sm:$0xff] }
  0x4c   : > { %2197 = vmatpush3.msra.mxu1 %v1598_v27  ;;  %2160 = vmatprep.subr.mxu0 %v1563_v28  ;;  %v1550_v6 = vunpack.c.l.bf16 %v2034_v56  ;;  %v1614_v7 = vunpack.c.l.bf16 %v2050_v57  ;;  %v1518_v10 = vunpack.c.l.bf16 %v2026_v60  ;;  %v1582_v11 = vunpack.c.l.bf16 %v2042_v61  ;;  %v213_v33 = vld [vmem:[#allocation3 + $0x8] sm:$0xff]  ;;  %v2070_v44 = vld [vmem:[%s2822_s23 + $0x170] sm:$0xff]  }
  0x4d   : > { %2198 = vmatprep.subr.mxu1 %v1627_v29  ;;  %2161 = vmatpush3.msra.mxu0 %v1531_v30  ;;  %v1547_v12 = vunpack.c.h.bf16 %v2033_v4  ;;  %v1611_v13 = vunpack.c.h.bf16 %v2049_v5  ;;  %v1515_v14 = vunpack.c.h.bf16 %v2025_v8  ;;  %v1579_v15 = vunpack.c.h.bf16 %v2041_v9  ;;  %v2086_v45 = vld [vmem:[%s2822_s23 + $0x1f0] sm:$0xff]   ;;  %v2069_v56 = vld [vmem:[%s2822_s23 + $0x168] sm:$0xff]  }
  0x4e   : > { %2199 = vmatpush3.msra.mxu1 %v1595_v31  ;;  %2162 = vmatprep.subr.mxu0 %v1562_v34  ;;  %v1546_v18 = vunpack.c.l.bf16 %v2033_v4  ;;  %v1610_v19 = vunpack.c.l.bf16 %v2049_v5  ;;  %v1514_v22 = vunpack.c.l.bf16 %v2025_v8  ;;  %v1578_v23 = vunpack.c.l.bf16 %v2041_v9  ;;  %v2071_v31 = vld [vmem:[%s2822_s23 + $0x178] sm:$0xff]   ;;  %v2062_v48 = vld [vmem:[%s2822_s23 + $0x130] sm:$0xff]   ;;  %v2085_v57 = vld [vmem:[%s2822_s23 + $0x1e8] sm:$0xff]  }
  0x4f   : > { %2200 = vmatprep.subr.mxu1 %v1626_v35  ;;  %2163 = vmatpush3.msra.mxu0 %v1530_v38  ;;  %v1543_v24 = vunpack.c.h.bf16 %v2032_v16  ;;  %v1607_v25 = vunpack.c.h.bf16 %v2048_v17  ;;  %v1511_v26 = vunpack.c.h.bf16 %v1509_v20  ;;  %v1575_v27 = vunpack.c.h.bf16 %v2040_v21  ;;  %v2063_v35 = vld [vmem:[%s2822_s23 + $0x138] sm:$0xff]   ;;  %v212_v38 = vld [vmem:[#allocation3] sm:$0xff]  ;;  %v2078_v49 = vld [vmem:[%s2822_s23 + $0x1b0] sm:$0xff]  }
  0x50   : > { %2201 = vmatpush3.msra.mxu1 %v1594_v39  ;;  %2164 = vmatprep.subr.mxu0 %v1559_v40  ;;  %v1542_v28 = vunpack.c.l.bf16 %v2032_v16  ;;  %v1606_v29 = vunpack.c.l.bf16 %v2048_v17  ;;  %v1510_v30 = vunpack.c.l.bf16 %v1509_v20  ;;  %v1574_v34 = vunpack.c.l.bf16 %v2040_v21  ;;  %v214_v39 = vld [vmem:[#allocation3 + $0x10] sm:$0xff]  ;;  %v2061_v60 = vld [vmem:[%s2822_s23 + $0x128] sm:$0xff]   ;;  %v2068_v4 = vld [vmem:[%s2822_s23 + $0x160] sm:$0xff]  }
  0x51   : > { %2202 = vmatprep.subr.mxu1 %v1623_v41  ;;  %2165 = vmatpush3.msra.mxu0 %v1527_v42  ;;  %v1699_v40 = vunpack.c.h.bf16 %v2071_v31  ;;  %v1763_v41 = vunpack.c.h.bf16 %v2087_v32  ;;  %v1667_v42 = vunpack.c.h.bf16 %v2063_v35  ;;  %v2077_v61 = vld [vmem:[%s2822_s23 + $0x1a8] sm:$0xff]   ;;  %v2084_v5 = vld [vmem:[%s2822_s23 + $0x1e0] sm:$0xff]   ;;  %v2067_v16 = vld [vmem:[%s2822_s23 + $0x158] sm:$0xff]  }
  0x52   : > { %2203 = vmatpush3.msra.mxu1 %v1591_v43  ;;  %2166 = vmatprep.subr.mxu0 %v1558_v46  ;;  %v1731_v43 = vunpack.c.h.bf16 %v2079_v36  ;;  %v1698_v46 = vunpack.c.l.bf16 %v2071_v31  ;;  %v2060_v8 = vld [vmem:[%s2822_s23 + $0x120] sm:$0xff]   ;;  %v2083_v17 = vld [vmem:[%s2822_s23 + $0x1d8] sm:$0xff]  }
  0x53   : > { %2204 = vmatprep.subr.mxu1 %v1622_v47  ;;  %2167 = vmatpush3.msra.mxu0 %v1526_v50  ;;  %v1762_v47 = vunpack.c.l.bf16 %v2087_v32  ;;  %v1666_v50 = vunpack.c.l.bf16 %v2063_v35  ;;  %v2076_v9 = vld [vmem:[%s2822_s23 + $0x1a0] sm:$0xff]   ;;  %v2059_v20 = vld [vmem:[%s2822_s23 + $0x118] sm:$0xff]   ;;  %v1746_v31 = vunpack.c.l.bf16 %v2083_v17  ;;  %v2058_v32 = vld [vmem:[%s2822_s23 + $0x110] sm:$0xff]  }
  0x54   : > { %2205 = vmatpush3.msra.mxu1 %v1590_v51  ;;  %2168 = vmatprep.subr.mxu0 %v1555_v52  ;;  %v1730_v51 = vunpack.c.l.bf16 %v2079_v36  ;;  %v1695_v52 = vunpack.c.h.bf16 %v2070_v44  ;;  %v2075_v21 = vld [vmem:[%s2822_s23 + $0x198] sm:$0xff]  }
  0x55   : > { %2206 = vmatprep.subr.mxu1 %v1619_v53  ;;  %2169 = vmatpush3.msra.mxu0 %v1523_v54  ;;  %v1759_v53 = vunpack.c.h.bf16 %v2086_v45  ;;  %v1663_v54 = vunpack.c.h.bf16 %v2062_v48  ;;  %v1714_v35 = vunpack.c.l.bf16 %v2075_v21 }
  0x56   : > { %2207 = vmatpush3.msra.mxu1 %v1587_v55  ;;  %2170 = vmatprep.subr.mxu0 %v1554_v58  ;;  %v1727_v55 = vunpack.c.h.bf16 %v2078_v49  ;;  %v1694_v58 = vunpack.c.l.bf16 %v2070_v44  ;;  %v2057_v44 = vld [vmem:[%s2822_s23 + $0x108] sm:$0xff]  }
  0x57   : > { %2208 = vmatprep.subr.mxu1 %v1618_v59  ;;  %2171 = vmatpush3.msra.mxu0 %v1522_v62  ;;  %v1758_v59 = vunpack.c.l.bf16 %v2086_v45  ;;  %v1662_v62 = vunpack.c.l.bf16 %v2062_v48  ;;  %v2073_v45 = vld [vmem:[%s2822_s23 + $0x188] sm:$0xff]  }
  0x58   : > { %2209 = vmatpush3.msra.mxu1 %v1586_v63  ;;  %2172 = vmatprep.subr.mxu0 %v1551_v0  ;;  %v1726_v63 = vunpack.c.l.bf16 %v2078_v49  ;;  %v1691_v0 = vunpack.c.h.bf16 %v2069_v56 }
  0x59   : > { %2210 = vmatprep.subr.mxu1 %v1615_v1  ;;  %2173 = vmatpush3.msra.mxu0 %v1519_v2  ;;  %v1755_v1 = vunpack.c.h.bf16 %v2085_v57  ;;  %v1659_v2 = vunpack.c.h.bf16 %v2061_v60 }
  0x5a   : > { %2211 = vmatpush3.msra.mxu1 %v1583_v3  ;;  %2174 = vmatprep.subr.mxu0 %v1550_v6  ;;  %v1723_v3 = vunpack.c.h.bf16 %v2077_v61  ;;  %v1690_v6 = vunpack.c.l.bf16 %v2069_v56  ;;  %v2064_v56 = vld [vmem:[%s2822_s23 + $0x140] sm:$0xff]  }
  0x5b   : > { %2212 = vmatprep.subr.mxu1 %v1614_v7  ;;  %2175 = vmatpush3.msra.mxu0 %v1518_v10  ;;  %v1754_v7 = vunpack.c.l.bf16 %v2085_v57  ;;  %v1658_v10 = vunpack.c.l.bf16 %v2061_v60  ;;  %v2080_v57 = vld [vmem:[%s2822_s23 + $0x1c0] sm:$0xff]  }
  0x5c   : > { %2213 = vmatpush3.msra.mxu1 %v1582_v11  ;;  %2176 = vmatprep.subr.mxu0 %v1547_v12  ;;  %v1722_v11 = vunpack.c.l.bf16 %v2077_v61  ;;  %v1687_v12 = vunpack.c.h.bf16 %v2068_v4  ;;  %v228_v60 = vld [vmem:[#allocation3 + $0x80] sm:$0xff]  ;;  %v230_v61 = vld [vmem:[#allocation3 + $0x90] sm:$0xff] }
  0x5d   : > { %2214 = vmatprep.subr.mxu1 %v1611_v13  ;;  %2177 = vmatpush3.msra.mxu0 %v1515_v14  ;;  %v1751_v13 = vunpack.c.h.bf16 %v2084_v5  ;;  %v1655_v14 = vunpack.c.h.bf16 %v2060_v8 }
  0x5e   : > { %2215 = vmatpush3.msra.mxu1 %v1579_v15  ;;  %2178 = vmatprep.subr.mxu0 %v1546_v18  ;;  %v1719_v15 = vunpack.c.h.bf16 %v2076_v9  ;;  %v1686_v18 = vunpack.c.l.bf16 %v2068_v4  ;;  %v1670_v4 = vunpack.c.l.bf16 %v2064_v56 }
  0x5f   : > { %2216 = vmatprep.subr.mxu1 %v1610_v19  ;;  %2179 = vmatpush3.msra.mxu0 %v1514_v22  ;;  %v1750_v19 = vunpack.c.l.bf16 %v2084_v5  ;;  %v1654_v22 = vunpack.c.l.bf16 %v2060_v8  ;;  %v1734_v5 = vunpack.c.l.bf16 %v2080_v57  ;;  %v2119_v8 = vld [vmem:[%s2822_s23 + $0x2f8] sm:$0xff]  }
  0x60   : > { %2217 = vmatpush3.msra.mxu1 %v1578_v23  ;;  %2180 = vmatprep.subr.mxu0 %v1543_v24  ;;  %v1718_v23 = vunpack.c.l.bf16 %v2076_v9  ;;  %v1683_v24 = vunpack.c.h.bf16 %v2067_v16  ;;  %v217_v9 = vld [vmem:[#allocation3 + $0x28] sm:$0xff] }
  0x61   : > { %2218 = vmatprep.subr.mxu1 %v1607_v25  ;;  %2181 = vmatpush3.msra.mxu0 %v1511_v26  ;;  %v1747_v25 = vunpack.c.h.bf16 %v2083_v17  ;;  %v1651_v26 = vunpack.c.h.bf16 %v2059_v20  ;;  %v218_v17 = vld [vmem:[#allocation3 + $0x30] sm:$0xff] }
  0x62   : > { %2219 = vmatpush3.msra.mxu1 %v1575_v27  ;;  %2182 = vmatprep.subr.mxu0 %v1542_v28  ;;  %v1715_v27 = vunpack.c.h.bf16 %v2075_v21  ;;  %v2066_v28 = vld [vmem:[%s2822_s23 + $0x150] sm:$0xff]   ;;  %v1890_v21 = vunpack.c.l.bf16 %v2119_v8 }
  0x63   : > { %2220 = vmatprep.subr.mxu1 %v1606_v29  ;;  %2183 = vmatpush3.msra.mxu0 %v1510_v30  ;;  %v2082_v29 = vld [vmem:[%s2822_s23 + $0x1d0] sm:$0xff]   ;;  %v1682_v30 = vunpack.c.l.bf16 %v2067_v16  ;;  %v1679_v36 = vunpack.c.h.bf16 %v2066_v28  ;;  %v1891_v16 = vunpack.c.h.bf16 %v2119_v8 }
  0x64   : > { %820 = vmatprep.mubr.f32.mxu0 %v213_v33  ;;  %2221 = vmatpush3.msra.mxu1 %v1574_v34  ;;  %v2074_v33 = vld [vmem:[%s2822_s23 + $0x190] sm:$0xff]   ;;  %v1650_v34 = vunpack.c.l.bf16 %v2059_v20 }
  0x65   : > { %895 = vmatprep.mubr.f32.mxu1 %v215_v37  ;;  %821 = vmatmul.mubr.f32.vlgmr.msra.gmra.mxu0 %v212_v38  ;;  %v1743_v37 = vunpack.c.h.bf16 %v2082_v29  ;;  %v1647_v38 = vunpack.c.h.bf16 %v2058_v32  ;;  %v2098_v8 = vld [vmem:[%s2822_s23 + $0x250] sm:$0xff]  }
  0x66   : > { %896 = vmatmul.mubr.f32.vlgmr.msra.gmra.mxu1 %v214_v39  ;;  %2228 = vmatprep.subr.mxu0 %v1699_v40  ;;  %v1711_v39 = vunpack.c.h.bf16 %v2074_v33  ;;  %v2065_v40 = vld [vmem:[%s2822_s23 + $0x148] sm:$0xff]  }
  0x67   : > { %2266 = vmatprep.subr.mxu1 %v1763_v41  ;;  %2229 = vmatpush3.msra.mxu0 %v1667_v42  ;;  %v2081_v41 = vld [vmem:[%s2822_s23 + $0x1c8] sm:$0xff]   ;;  %v1678_v42 = vunpack.c.l.bf16 %v2066_v28  ;;  %v1675_v48 = vunpack.c.h.bf16 %v2065_v40  ;;  %v2110_v28 = vld [vmem:[%s2822_s23 + $0x2b0] sm:$0xff]  }
  0x68   : > { %2267 = vmatpush3.msra.mxu1 %v1731_v43  ;;  %2230 = vmatprep.subr.mxu0 %v1698_v46  ;;  %v1742_v43 = vunpack.c.l.bf16 %v2082_v29  ;;  %v1646_v46 = vunpack.c.l.bf16 %v2058_v32  ;;  %v1739_v49 = vunpack.c.h.bf16 %v2081_v41  ;;  %v232_v29 = vld [vmem:[#allocation3 + $0xa0] sm:$0xff] }
  0x69   : > { %2268 = vmatprep.subr.mxu1 %v1762_v47  ;;  %2231 = vmatpush3.msra.mxu0 %v1666_v50  ;;  %v1710_v47 = vunpack.c.l.bf16 %v2074_v33  ;;  %v1643_v50 = vunpack.c.h.bf16 %v2057_v44  ;;  %v235_v33 = vld [vmem:[#allocation3 + $0xb8] sm:$0xff] }
  0x6a   : > { %2269 = vmatpush3.msra.mxu1 %v1730_v51  ;;  %2232 = vmatprep.subr.mxu0 %v1695_v52  ;;  %v1707_v51 = vunpack.c.h.bf16 %v2073_v45  ;;  %v229_v52 = vld [vmem:[#allocation3 + $0x88] sm:$0xff] }
  0x6b   : > { %2270 = vmatprep.subr.mxu1 %v1759_v53  ;;  %2233 = vmatpush3.msra.mxu0 %v1663_v54  ;;  %v231_v53 = vld [vmem:[#allocation3 + $0x98] sm:$0xff]  ;;  %v1674_v54 = vunpack.c.l.bf16 %v2065_v40  ;;  %v2109_v40 = vld [vmem:[%s2822_s23 + $0x2a8] sm:$0xff]  }
  0x6c   : > { %2271 = vmatpush3.msra.mxu1 %v1727_v55  ;;  %2234 = vmatprep.subr.mxu0 %v1694_v58  ;;  %v1738_v55 = vunpack.c.l.bf16 %v2081_v41  ;;  %v2056_v58 = vld [vmem:[%s2822_s23 + $0x100] sm:$0xff]   ;;  %v234_v41 = vld [vmem:[#allocation3 + $0xb0] sm:$0xff] }
  0x6d   : > { %2272 = vmatprep.subr.mxu1 %v1758_v59  ;;  %2235 = vmatpush3.msra.mxu0 %v1662_v62  ;;  %v2072_v59 = vld [vmem:[%s2822_s23 + $0x180] sm:$0xff]   ;;  %v1642_v62 = vunpack.c.l.bf16 %v2057_v44 }
  0x6e   : > { %2273 = vmatpush3.msra.mxu1 %v1726_v63  ;;  %2236 = vmatprep.subr.mxu0 %v1691_v0  ;;  %v1706_v63 = vunpack.c.l.bf16 %v2073_v45  ;;  %v1671_v0 = vunpack.c.h.bf16 %v2064_v56 }
  0x6f   : > { %2274 = vmatprep.subr.mxu1 %v1755_v1  ;;  %2237 = vmatpush3.msra.mxu0 %v1659_v2  ;;  %v1735_v1 = vunpack.c.h.bf16 %v2080_v57  ;;  %v1639_v2 = vunpack.c.h.bf16 %v2056_v58 }
  0x70   : > { %2275 = vmatpush3.msra.mxu1 %v1723_v3  ;;  %2238 = vmatprep.subr.mxu0 %v1690_v6  ;;  %v1703_v3 = vunpack.c.h.bf16 %v2072_v59  ;;  %v2103_v6 = vld [vmem:[%s2822_s23 + $0x278] sm:$0xff]  }
  0x71   : > { %2276 = vmatprep.subr.mxu1 %v1754_v7  ;;  %2239 = vmatpush3.msra.mxu0 %v1658_v10  ;;  %v1638_v7 = vunpack.c.l.bf16 %v2056_v58  ;;  %v1702_v10 = vunpack.c.l.bf16 %v2072_v59  ;;  %v1826_v20 = vunpack.c.l.bf16 %v2103_v6 }
  0x72   : > { %2277 = vmatpush3.msra.mxu1 %v1722_v11  ;;  %2240 = vmatprep.subr.mxu0 %v1687_v12  ;;  %v2095_v11 = vld [vmem:[%s2822_s23 + $0x238] sm:$0xff]  }
  0x73   : > { %2278 = vmatprep.subr.mxu1 %v1751_v13  ;;  %2241 = vmatpush3.msra.mxu0 %v1655_v14  ;;  %v2111_v12 = vld [vmem:[%s2822_s23 + $0x2b8] sm:$0xff]   ;;  %v216_v13 = vld [vmem:[#allocation3 + $0x20] sm:$0xff]  ;;  %v1827_v14 = vunpack.c.h.bf16 %v2103_v6 }
  0x74   : > { %2279 = vmatpush3.msra.mxu1 %v1719_v15  ;;  %2242 = vmatprep.subr.mxu0 %v1686_v18  ;;  %v219_v15 = vld [vmem:[#allocation3 + $0x38] sm:$0xff]  ;;  %v1795_v18 = vunpack.c.h.bf16 %v2095_v11 }
  0x75   : > { %2280 = vmatprep.subr.mxu1 %v1750_v19  ;;  %2243 = vmatpush3.msra.mxu0 %v1654_v22  ;;  %v1859_v19 = vunpack.c.h.bf16 %v2111_v12  ;;  %v2102_v22 = vld [vmem:[%s2822_s23 + $0x270] sm:$0xff]  }
  0x76   : > { %2281 = vmatpush3.msra.mxu1 %v1718_v23  ;;  %2244 = vmatprep.subr.mxu0 %v1683_v24  ;;  %v2118_v23 = vld [vmem:[%s2822_s23 + $0x2f0] sm:$0xff]   ;;  %v1794_v24 = vunpack.c.l.bf16 %v2095_v11 }
  0x77   : > { %2282 = vmatprep.subr.mxu1 %v1747_v25  ;;  %2245 = vmatpush3.msra.mxu0 %v1651_v26  ;;  %v2094_v25 = vld [vmem:[%s2822_s23 + $0x230] sm:$0xff]   ;;  %v233_v26 = vld [vmem:[#allocation3 + $0xa8] sm:$0xff] }
  0x78   : > { %2283 = vmatpush3.msra.mxu1 %v1715_v27  ;;  %2246 = vmatprep.subr.mxu0 %v1682_v30  ;;  %v1858_v27 = vunpack.c.l.bf16 %v2111_v12  ;;  %v1823_v30 = vunpack.c.h.bf16 %v2102_v22  ;;  %v1791_v32 = vunpack.c.h.bf16 %v2094_v25  ;;  %v2090_v12 = vld [vmem:[%s2822_s23 + $0x210] sm:$0xff]  }
  0x79   : > { %2284 = vmatprep.subr.mxu1 %v1746_v31  ;;  %2247 = vmatpush3.msra.mxu0 %v1650_v34  ;;  %v1887_v31 = vunpack.c.h.bf16 %v2118_v23  ;;  %v1855_v34 = vunpack.c.h.bf16 %v2110_v28 }
  0x7a   : > { %2285 = vmatpush3.msra.mxu1 %v1714_v35  ;;  %2248 = vmatprep.subr.mxu0 %v1679_v36  ;;  %v1822_v35 = vunpack.c.l.bf16 %v2102_v22  ;;  %v2101_v36 = vld [vmem:[%s2822_s23 + $0x268] sm:$0xff]   ;;  %v1806_v22 = vunpack.c.l.bf16 %v2098_v8 }
  0x7b   : > { %2286 = vmatprep.subr.mxu1 %v1743_v37  ;;  %2249 = vmatpush3.msra.mxu0 %v1647_v38  ;;  %v2117_v37 = vld [vmem:[%s2822_s23 + $0x2e8] sm:$0xff]   ;;  %v1886_v38 = vunpack.c.l.bf16 %v2118_v23  ;;  %v1819_v44 = vunpack.c.h.bf16 %v2101_v36 }
  0x7c   : > { %2287 = vmatpush3.msra.mxu1 %v1711_v39  ;;  %2250 = vmatprep.subr.mxu0 %v1678_v42  ;;  %v2093_v39 = vld [vmem:[%s2822_s23 + $0x228] sm:$0xff]   ;;  %v1790_v42 = vunpack.c.l.bf16 %v2094_v25  ;;  %v1883_v45 = vunpack.c.h.bf16 %v2117_v37 }
  0x7d   : > { %2288 = vmatprep.subr.mxu1 %v1742_v43  ;;  %2251 = vmatpush3.msra.mxu0 %v1646_v46  ;;  %v1854_v43 = vunpack.c.l.bf16 %v2110_v28  ;;  %v1787_v46 = vunpack.c.h.bf16 %v2093_v39  ;;  %v2105_v25 = vld [vmem:[%s2822_s23 + $0x288] sm:$0xff]  }
  0x7e   : > { %2289 = vmatpush3.msra.mxu1 %v1710_v47  ;;  %2252 = vmatprep.subr.mxu0 %v1675_v48  ;;  %v1851_v47 = vunpack.c.h.bf16 %v2109_v40  ;;  %v2100_v48 = vld [vmem:[%s2822_s23 + $0x260] sm:$0xff]  }
  0x7f   : > { %2290 = vmatprep.subr.mxu1 %v1739_v49  ;;  %2253 = vmatpush3.msra.mxu0 %v1643_v50  ;;  %v2116_v49 = vld [vmem:[%s2822_s23 + $0x2e0] sm:$0xff]   ;;  %v1818_v50 = vunpack.c.l.bf16 %v2101_v36  ;;  %v1815_v56 = vunpack.c.h.bf16 %v2100_v48 }
  0x80   : > { %2291 = vmatpush3.msra.mxu1 %v1707_v51  ;;  %825 = vmatprep.mubr.f32.mxu0 %v229_v52  ;;  %v1882_v51 = vunpack.c.l.bf16 %v2117_v37  ;;  %v2092_v52 = vld [vmem:[%s2822_s23 + $0x220] sm:$0xff]   ;;  %v1879_v57 = vunpack.c.h.bf16 %v2116_v49 }
  0x81   : > { %900 = vmatprep.mubr.f32.mxu1 %v231_v53  ;;  %2254 = vmatprep.subr.mxu0 %v1674_v54  ;;  %v2108_v53 = vld [vmem:[%s2822_s23 + $0x2a0] sm:$0xff]   ;;  %v1786_v54 = vunpack.c.l.bf16 %v2093_v39  ;;  %v1783_v58 = vunpack.c.h.bf16 %v2092_v52  ;;  %v1834_v39 = vunpack.c.l.bf16 %v2105_v25 }
  0x82   : > { %2292 = vmatprep.subr.mxu1 %v1738_v55  ;;  %826 = vmatmul.mubr.f32.gmra.mxu0 %v228_v60  ;;  %v1850_v55 = vunpack.c.l.bf16 %v2109_v40  ;;  %v1847_v59 = vunpack.c.h.bf16 %v2108_v53  ;;  %v2099_v60 = vld [vmem:[%s2822_s23 + $0x258] sm:$0xff]   ;;  %v2088_v36 = vld [vmem:[%s2822_s23 + $0x200] sm:$0xff]  }
  0x83   : > { %901 = vmatmul.mubr.f32.gmra.mxu1 %v230_v61  ;;  %2255 = vmatpush3.msra.mxu0 %v1642_v62  ;;  %v2115_v61 = vld [vmem:[%s2822_s23 + $0x2d8] sm:$0xff]   ;;  %v1814_v62 = vunpack.c.l.bf16 %v2100_v48  ;;  %v2104_v37 = vld [vmem:[%s2822_s23 + $0x280] sm:$0xff]  }
  0x84   : > { %2293 = vmatpush3.msra.mxu1 %v1706_v63  ;;  %2256 = vmatprep.subr.mxu0 %v1671_v0  ;;  %v1878_v63 = vunpack.c.l.bf16 %v2116_v49  ;;  %v2091_v0 = vld [vmem:[%s2822_s23 + $0x218] sm:$0xff]   ;;  %v1874_v11 = vunpack.c.l.bf16 %v2115_v61  ;;  %v221_v49 = vld [vmem:[#allocation3 + $0x48] sm:$0xff] }
  0x85   : > { %2294 = vmatprep.subr.mxu1 %v1735_v1  ;;  %2257 = vmatpush3.msra.mxu0 %v1639_v2  ;;  %v2107_v1 = vld [vmem:[%s2822_s23 + $0x298] sm:$0xff]   ;;  %v1782_v2 = vunpack.c.l.bf16 %v2092_v52  ;;  %v1779_v6 = vunpack.c.h.bf16 %v2091_v0 }
  0x86   : > { %2295 = vmatpush3.msra.mxu1 %v1703_v3  ;;  %2258 = vmatprep.subr.mxu0 %v1670_v4  ;;  %v1846_v3 = vunpack.c.l.bf16 %v2108_v53  ;;  %v1811_v4 = vunpack.c.h.bf16 %v2099_v60  ;;  %v2151_v48 = vld [vmem:[%s2822_s23 + $0x3f8] sm:$0xff]   ;;  %v220_v53 = vld [vmem:[#allocation3 + $0x40] sm:$0xff] }
  0x87   : > { %2296 = vmatprep.subr.mxu1 %v1734_v5  ;;  %2259 = vmatpush3.msra.mxu0 %v1638_v7  ;;  %v1875_v5 = vunpack.c.h.bf16 %v2115_v61  ;;  %v1843_v7 = vunpack.c.h.bf16 %v2107_v1  ;;  %v2143_v52 = vld [vmem:[%s2822_s23 + $0x3b8] sm:$0xff]   ;;  %v2018_v61 = vunpack.c.l.bf16 %v2151_v48 }
  0x88   : > { %970 = vmatprep.mubr.f32.mxu0 %v217_v9  ;;  %2297 = vmatpush3.msra.mxu1 %v1702_v10  ;;  %v2114_v9 = vld [vmem:[%s2822_s23 + $0x2d0] sm:$0xff]   ;;  %v1810_v10 = vunpack.c.l.bf16 %v2099_v60 }
  0x89   : > { %971 = vmatmul.mubr.f32.vlgmr.msra.gmra.mxu0 %v216_v13  ;;  %1045 = vmatprep.mubr.f32.mxu1 %v219_v15  ;;  %v2106_v13 = vld [vmem:[%s2822_s23 + $0x290] sm:$0xff]   ;;  %v1842_v15 = vunpack.c.l.bf16 %v2107_v1  ;;  %v1870_v23 = vunpack.c.l.bf16 %v2114_v9 }
  0x8a   : > { %2304 = vmatprep.subr.mxu0 %v1827_v14  ;;  %2342 = vmatprep.subr.mxu1 %v1891_v16  ;;  %v1778_v14 = vunpack.c.l.bf16 %v2091_v0  ;;  %v1807_v16 = vunpack.c.h.bf16 %v2098_v8  ;;  %v2126_v1 = vld [vmem:[%s2822_s23 + $0x330] sm:$0xff]  }
  0x8b   : > { %1046 = vmatmul.mubr.f32.vlgmr.msra.gmra.mxu1 %v218_v17  ;;  %2305 = vmatpush3.msra.mxu0 %v1795_v18  ;;  %v1871_v17 = vunpack.c.h.bf16 %v2114_v9  ;;  %v1775_v18 = vunpack.c.h.bf16 %v2090_v12  ;;  %v1919_v8 = vunpack.c.h.bf16 %v2126_v1  ;;  %v239_v9 = vld [vmem:[#allocation3 + $0xd8] sm:$0xff] }
  0x8c   : > { %2343 = vmatpush3.msra.mxu1 %v1859_v19  ;;  %2306 = vmatprep.subr.mxu0 %v1826_v20  ;;  %v1839_v19 = vunpack.c.h.bf16 %v2106_v13  ;;  %v2097_v20 = vld [vmem:[%s2822_s23 + $0x248] sm:$0xff]  }
  0x8d   : > { %2344 = vmatprep.subr.mxu1 %v1890_v21  ;;  %975 = vmatprep.mubr.f32.mxu0 %v233_v26  ;;  %v2113_v21 = vld [vmem:[%s2822_s23 + $0x2c8] sm:$0xff]   ;;  %v1774_v26 = vunpack.c.l.bf16 %v2090_v12  ;;  %v1803_v28 = vunpack.c.h.bf16 %v2097_v20 }
  0x8e   : > { %2307 = vmatpush3.msra.mxu0 %v1794_v24  ;;  %2345 = vmatpush3.msra.mxu1 %v1858_v27  ;;  %v2089_v24 = vld [vmem:[%s2822_s23 + $0x208] sm:$0xff]   ;;  %v1838_v27 = vunpack.c.l.bf16 %v2106_v13 }
  0x8f   : > { %976 = vmatmul.mubr.f32.gmra.mxu0 %v232_v29  ;;  %2308 = vmatprep.subr.mxu0 %v1823_v30  ;;  %v1867_v29 = vunpack.c.h.bf16 %v2113_v21  ;;  %v1771_v30 = vunpack.c.h.bf16 %v2089_v24  ;;  %v2133_v12 = vld [vmem:[%s2822_s23 + $0x368] sm:$0xff]  }
  0x90   : > { %2346 = vmatprep.subr.mxu1 %v1887_v31  ;;  %1050 = vmatprep.mubr.f32.mxu1 %v235_v33  ;;  %v1835_v31 = vunpack.c.h.bf16 %v2105_v25  ;;  %v2112_v33 = vld [vmem:[%s2822_s23 + $0x2c0] sm:$0xff]   ;;  %v2149_v13 = vld [vmem:[%s2822_s23 + $0x3e8] sm:$0xff]  }
  0x91   : > { %2309 = vmatpush3.msra.mxu0 %v1791_v32  ;;  %2347 = vmatpush3.msra.mxu1 %v1855_v34  ;;  %v2096_v32 = vld [vmem:[%s2822_s23 + $0x240] sm:$0xff]   ;;  %v1802_v34 = vunpack.c.l.bf16 %v2097_v20  ;;  %v1947_v20 = vunpack.c.h.bf16 %v2133_v12 }
  0x92   : > { %2310 = vmatprep.subr.mxu0 %v1822_v35  ;;  %1051 = vmatmul.mubr.f32.gmra.mxu1 %v234_v41  ;;  %v1866_v35 = vunpack.c.l.bf16 %v2113_v21  ;;  %v1799_v40 = vunpack.c.h.bf16 %v2096_v32  ;;  %v1863_v41 = vunpack.c.h.bf16 %v2112_v33  ;;  %v2011_v21 = vunpack.c.h.bf16 %v2149_v13  ;;  %v2148_v25 = vld [vmem:[%s2822_s23 + $0x3e0] sm:$0xff]  }
  0x93   : > { %2348 = vmatprep.subr.mxu1 %v1886_v38  ;;  %2311 = vmatpush3.msra.mxu0 %v1790_v42  ;;  %v1770_v38 = vunpack.c.l.bf16 %v2089_v24  ;;  %v1767_v42 = vunpack.c.h.bf16 %v2088_v36  ;;  %v2132_v24 = vld [vmem:[%s2822_s23 + $0x360] sm:$0xff]  }
  0x94   : > { %2349 = vmatpush3.msra.mxu1 %v1854_v43  ;;  %2312 = vmatprep.subr.mxu0 %v1819_v44  ;;  %v1831_v43 = vunpack.c.h.bf16 %v2104_v37  ;;  %v1798_v44 = vunpack.c.l.bf16 %v2096_v32  ;;  %v1943_v32 = vunpack.c.h.bf16 %v2132_v24 }
  0x95   : > { %2350 = vmatprep.subr.mxu1 %v1883_v45  ;;  %2313 = vmatpush3.msra.mxu0 %v1787_v46  ;;  %v1862_v45 = vunpack.c.l.bf16 %v2112_v33  ;;  %v2135_v46 = vld [vmem:[%s2822_s23 + $0x378] sm:$0xff]   ;;  %v2007_v33 = vunpack.c.h.bf16 %v2148_v25 }
  0x96   : > { %2351 = vmatpush3.msra.mxu1 %v1851_v47  ;;  %2314 = vmatprep.subr.mxu0 %v1818_v50  ;;  %v1766_v47 = vunpack.c.l.bf16 %v2088_v36  ;;  %v1830_v50 = vunpack.c.l.bf16 %v2104_v37  ;;  %v1954_v60 = vunpack.c.l.bf16 %v2135_v46  ;;  %v2131_v36 = vld [vmem:[%s2822_s23 + $0x358] sm:$0xff]  }
  0x97   : > { %2352 = vmatprep.subr.mxu1 %v1882_v51  ;;  %2315 = vmatpush3.msra.mxu0 %v1786_v54  ;;  %v2127_v51 = vld [vmem:[%s2822_s23 + $0x338] sm:$0xff]   ;;  %v1955_v54 = vunpack.c.h.bf16 %v2135_v46 }
  0x98   : > { %2353 = vmatpush3.msra.mxu1 %v1850_v55  ;;  %2316 = vmatprep.subr.mxu0 %v1815_v56  ;;  %v223_v55 = vld [vmem:[#allocation3 + $0x58] sm:$0xff]  ;;  %v2019_v56 = vunpack.c.h.bf16 %v2151_v48  ;;  %v1922_v0 = vunpack.c.l.bf16 %v2127_v51  ;;  %v2130_v48 = vld [vmem:[%s2822_s23 + $0x350] sm:$0xff]  }
  0x99   : > { %2354 = vmatprep.subr.mxu1 %v1879_v57  ;;  %2317 = vmatpush3.msra.mxu0 %v1783_v58  ;;  %v222_v57 = vld [vmem:[#allocation3 + $0x50] sm:$0xff]  ;;  %v1923_v58 = vunpack.c.h.bf16 %v2127_v51  ;;  %v2147_v37 = vld [vmem:[%s2822_s23 + $0x3d8] sm:$0xff]  }
  0x9a   : > { %2355 = vmatpush3.msra.mxu1 %v1847_v59  ;;  %2318 = vmatprep.subr.mxu0 %v1814_v62  ;;  %v1987_v59 = vunpack.c.h.bf16 %v2143_v52  ;;  %v2134_v62 = vld [vmem:[%s2822_s23 + $0x370] sm:$0xff]   ;;  %v2002_v51 = vunpack.c.l.bf16 %v2147_v37 }
  0x9b   : > { %2356 = vmatprep.subr.mxu1 %v1878_v63  ;;  %2319 = vmatpush3.msra.mxu0 %v1782_v2  ;;  %v2150_v63 = vld [vmem:[%s2822_s23 + $0x3f0] sm:$0xff]   ;;  %v237_v2 = vld [vmem:[#allocation3 + $0xc8] sm:$0xff] }
  0x9c   : > { %2357 = vmatpush3.msra.mxu1 %v1846_v3  ;;  %2320 = vmatprep.subr.mxu0 %v1811_v4  ;;  %v1986_v3 = vunpack.c.l.bf16 %v2143_v52  ;;  %v2142_v4 = vld [vmem:[%s2822_s23 + $0x3b0] sm:$0xff]  }
  0x9d   : > { %2358 = vmatprep.subr.mxu1 %v1875_v5  ;;  %2321 = vmatpush3.msra.mxu0 %v1779_v6  ;;  %v236_v5 = vld [vmem:[#allocation3 + $0xc0] sm:$0xff]  ;;  %v1951_v6 = vunpack.c.h.bf16 %v2134_v62  ;;  %v2122_v52 = vld [vmem:[%s2822_s23 + $0x310] sm:$0xff]  }
  0x9e   : > { %2359 = vmatpush3.msra.mxu1 %v1843_v7  ;;  %2322 = vmatprep.subr.mxu0 %v1810_v10  ;;  %v2015_v7 = vunpack.c.h.bf16 %v2150_v63  ;;  %v1983_v10 = vunpack.c.h.bf16 %v2142_v4 }
  0x9f   : > { %2360 = vmatprep.subr.mxu1 %v1874_v11  ;;  %2323 = vmatpush3.msra.mxu0 %v1778_v14  ;;  %v1950_v11 = vunpack.c.l.bf16 %v2134_v62  ;;  %v2014_v14 = vunpack.c.l.bf16 %v2150_v63  ;;  %v1934_v62 = vunpack.c.l.bf16 %v2130_v48 }
  0xa0   : > { %2361 = vmatpush3.msra.mxu1 %v1842_v15  ;;  %2324 = vmatprep.subr.mxu0 %v1807_v16  ;;  %v2125_v15 = vld [vmem:[%s2822_s23 + $0x328] sm:$0xff]  }
  0xa1   : > { %2362 = vmatprep.subr.mxu1 %v1871_v17  ;;  %2325 = vmatpush3.msra.mxu0 %v1775_v18  ;;  %v2141_v16 = vld [vmem:[%s2822_s23 + $0x3a8] sm:$0xff]   ;;  %v238_v17 = vld [vmem:[#allocation3 + $0xd0] sm:$0xff]  ;;  %v1918_v18 = vunpack.c.l.bf16 %v2126_v1 }
  0xa2   : > { %2363 = vmatpush3.msra.mxu1 %v1839_v19  ;;  %2326 = vmatprep.subr.mxu0 %v1806_v22  ;;  %v1982_v19 = vunpack.c.l.bf16 %v2142_v4  ;;  %v1915_v22 = vunpack.c.h.bf16 %v2125_v15  ;;  %v2137_v1 = vld [vmem:[%s2822_s23 + $0x388] sm:$0xff]  }
  0xa3   : > { %2364 = vmatprep.subr.mxu1 %v1870_v23  ;;  %2327 = vmatpush3.msra.mxu0 %v1774_v26  ;;  %v1979_v23 = vunpack.c.h.bf16 %v2141_v16  ;;  %v1946_v26 = vunpack.c.l.bf16 %v2133_v12  ;;  %v2120_v12 = vld [vmem:[%s2822_s23 + $0x300] sm:$0xff]  }
  0xa4   : > { %2365 = vmatpush3.msra.mxu1 %v1838_v27  ;;  %2328 = vmatprep.subr.mxu0 %v1803_v28  ;;  %v2010_v27 = vunpack.c.l.bf16 %v2149_v13  ;;  %v2124_v28 = vld [vmem:[%s2822_s23 + $0x320] sm:$0xff]  }
  0xa5   : > { %2366 = vmatprep.subr.mxu1 %v1867_v29  ;;  %2329 = vmatpush3.msra.mxu0 %v1771_v30  ;;  %v2140_v29 = vld [vmem:[%s2822_s23 + $0x3a0] sm:$0xff]   ;;  %v1914_v30 = vunpack.c.l.bf16 %v2125_v15  ;;  %v1962_v15 = vunpack.c.l.bf16 %v2137_v1 }
  0xa6   : > { %2367 = vmatpush3.msra.mxu1 %v1835_v31  ;;  %2330 = vmatprep.subr.mxu0 %v1802_v34  ;;  %v1978_v31 = vunpack.c.l.bf16 %v2141_v16  ;;  %v1911_v34 = vunpack.c.h.bf16 %v2124_v28  ;;  %v2136_v13 = vld [vmem:[%s2822_s23 + $0x380] sm:$0xff]  }
  0xa7   : > { %2368 = vmatprep.subr.mxu1 %v1866_v35  ;;  %2331 = vmatpush3.msra.mxu0 %v1770_v38  ;;  %v1975_v35 = vunpack.c.h.bf16 %v2140_v29  ;;  %v1942_v38 = vunpack.c.l.bf16 %v2132_v24  ;;  %v1958_v24 = vunpack.c.l.bf16 %v2136_v13 }
  0xa8   : > { %2369 = vmatpush3.msra.mxu1 %v1834_v39  ;;  %2332 = vmatprep.subr.mxu0 %v1799_v40  ;;  %v2006_v39 = vunpack.c.l.bf16 %v2148_v25  ;;  %v2123_v40 = vld [vmem:[%s2822_s23 + $0x318] sm:$0xff]  }
  0xa9   : > { %2370 = vmatprep.subr.mxu1 %v1863_v41  ;;  %2333 = vmatpush3.msra.mxu0 %v1767_v42  ;;  %v2139_v41 = vld [vmem:[%s2822_s23 + $0x398] sm:$0xff]   ;;  %v1910_v42 = vunpack.c.l.bf16 %v2124_v28  ;;  %v1907_v46 = vunpack.c.h.bf16 %v2123_v40  ;;  %v241_v28 = vld [vmem:[#allocation3 + $0xe8] sm:$0xff] }
  0xaa   : > { %2371 = vmatpush3.msra.mxu1 %v1831_v43  ;;  %2334 = vmatprep.subr.mxu0 %v1798_v44  ;;  %v1974_v43 = vunpack.c.l.bf16 %v2140_v29  ;;  %v1939_v44 = vunpack.c.h.bf16 %v2131_v36  ;;  %v227_v25 = vld [vmem:[#allocation3 + $0x78] sm:$0xff] }
  0xab   : > { %2372 = vmatprep.subr.mxu1 %v1862_v45  ;;  %2335 = vmatpush3.msra.mxu0 %v1766_v47  ;;  %v2003_v45 = vunpack.c.h.bf16 %v2147_v37  ;;  %v1971_v47 = vunpack.c.h.bf16 %v2139_v41  ;;  %v243_v29 = vld [vmem:[#allocation3 + $0xf8] sm:$0xff] }
  0xac   : > { %1120 = vmatprep.mubr.f32.mxu0 %v221_v49  ;;  %2373 = vmatpush3.msra.mxu1 %v1830_v50  ;;  %v2146_v49 = vld [vmem:[%s2822_s23 + $0x3d0] sm:$0xff]   ;;  %v1938_v50 = vunpack.c.l.bf16 %v2131_v36 }
  0xad   : > { %1121 = vmatmul.mubr.f32.vlgmr.msra.gmra.mxu0 %v220_v53  ;;  %1195 = vmatprep.mubr.f32.mxu1 %v223_v55  ;;  %v2138_v53 = vld [vmem:[%s2822_s23 + $0x390] sm:$0xff]   ;;  %v1970_v55 = vunpack.c.l.bf16 %v2139_v41  ;;  %v1998_v63 = vunpack.c.l.bf16 %v2146_v49 }
  0xae   : > { %2380 = vmatprep.subr.mxu0 %v1955_v54  ;;  %2418 = vmatprep.subr.mxu1 %v2019_v56  ;;  %v1906_v54 = vunpack.c.l.bf16 %v2123_v40  ;;  %v1935_v56 = vunpack.c.h.bf16 %v2130_v48 }
  0xaf   : > { %1196 = vmatmul.mubr.f32.vlgmr.msra.gmra.mxu1 %v222_v57  ;;  %2381 = vmatpush3.msra.mxu0 %v1923_v58  ;;  %v1999_v57 = vunpack.c.h.bf16 %v2146_v49  ;;  %v1903_v58 = vunpack.c.h.bf16 %v2122_v52 }
  0xb0   : > { %2419 = vmatpush3.msra.mxu1 %v1987_v59  ;;  %2382 = vmatprep.subr.mxu0 %v1954_v60  ;;  %v1967_v59 = vunpack.c.h.bf16 %v2138_v53  ;;  %v2129_v60 = vld [vmem:[%s2822_s23 + $0x348] sm:$0xff]  }
  0xb1   : > { %2420 = vmatprep.subr.mxu1 %v2018_v61  ;;  %1125 = vmatprep.mubr.f32.mxu0 %v237_v2  ;;  %v2145_v61 = vld [vmem:[%s2822_s23 + $0x3c8] sm:$0xff]   ;;  %v1902_v2 = vunpack.c.l.bf16 %v2122_v52  ;;  %v1931_v4 = vunpack.c.h.bf16 %v2129_v60 }
  0xb2   : > { %2383 = vmatpush3.msra.mxu0 %v1922_v0  ;;  %2421 = vmatpush3.msra.mxu1 %v1986_v3  ;;  %v2121_v0 = vld [vmem:[%s2822_s23 + $0x308] sm:$0xff]   ;;  %v1966_v3 = vunpack.c.l.bf16 %v2138_v53 }
  0xb3   : > { %1126 = vmatmul.mubr.f32.gmra.mxu0 %v236_v5  ;;  %2384 = vmatprep.subr.mxu0 %v1951_v6  ;;  %v1995_v5 = vunpack.c.h.bf16 %v2145_v61  ;;  %v1899_v6 = vunpack.c.h.bf16 %v2121_v0 }
  0xb4   : > { %2422 = vmatprep.subr.mxu1 %v2015_v7  ;;  %1200 = vmatprep.mubr.f32.mxu1 %v239_v9  ;;  %v1963_v7 = vunpack.c.h.bf16 %v2137_v1  ;;  %v2144_v9 = vld [vmem:[%s2822_s23 + $0x3c0] sm:$0xff]  }
  0xb5   : > { %2385 = vmatpush3.msra.mxu0 %v1919_v8  ;;  %2423 = vmatpush3.msra.mxu1 %v1983_v10  ;;  %v2128_v8 = vld [vmem:[%s2822_s23 + $0x340] sm:$0xff]   ;;  %v1930_v10 = vunpack.c.l.bf16 %v2129_v60 }
  0xb6   : > { %2386 = vmatprep.subr.mxu0 %v1950_v11  ;;  %1201 = vmatmul.mubr.f32.gmra.mxu1 %v238_v17  ;;  %v1994_v11 = vunpack.c.l.bf16 %v2145_v61  ;;  %v1927_v16 = vunpack.c.h.bf16 %v2128_v8  ;;  %v1991_v17 = vunpack.c.h.bf16 %v2144_v9 }
  0xb7   : > { %2424 = vmatprep.subr.mxu1 %v2014_v14  ;;  %2387 = vmatpush3.msra.mxu0 %v1918_v18  ;;  %v1898_v14 = vunpack.c.l.bf16 %v2121_v0  ;;  %v1895_v18 = vunpack.c.h.bf16 %v2120_v12 }
  0xb8   : > { %2425 = vmatpush3.msra.mxu1 %v1982_v19  ;;  %2388 = vmatprep.subr.mxu0 %v1947_v20  ;;  %v1959_v19 = vunpack.c.h.bf16 %v2136_v13  ;;  %v1926_v20 = vunpack.c.l.bf16 %v2128_v8 }
  0xb9   : > { %2426 = vmatprep.subr.mxu1 %v2011_v21  ;;  %2389 = vmatpush3.msra.mxu0 %v1915_v22  ;;  %v1990_v21 = vunpack.c.l.bf16 %v2144_v9  ;;  %v1894_v22 = vunpack.c.l.bf16 %v2120_v12 }
  0xba   : > { %2427 = vmatpush3.msra.mxu1 %v1979_v23  ;;  %2390 = vmatprep.subr.mxu0 %v1946_v26  ;;  %v225_v23 = vld [vmem:[#allocation3 + $0x68] sm:$0xff]  ;;  %v224_v26 = vld [vmem:[#allocation3 + $0x60] sm:$0xff] }
  0xbb   : > { %2428 = vmatprep.subr.mxu1 %v2010_v27  ;;  %2391 = vmatpush3.msra.mxu0 %v1914_v30  ;;  %v226_v27 = vld [vmem:[#allocation3 + $0x70] sm:$0xff]  ;;  %v240_v30 = vld [vmem:[#allocation3 + $0xe0] sm:$0xff] }
  0xbc   : > { %2429 = vmatpush3.msra.mxu1 %v1978_v31  ;;  %2392 = vmatprep.subr.mxu0 %v1943_v32  ;;  %v242_v31 = vld [vmem:[#allocation3 + $0xf0] sm:$0xff] }
  0xbd   : > { %2430 = vmatprep.subr.mxu1 %v2007_v33  ;;  %2393 = vmatpush3.msra.mxu0 %v1911_v34 }
  0xbe   : > { %2431 = vmatpush3.msra.mxu1 %v1975_v35  ;;  %2394 = vmatprep.subr.mxu0 %v1942_v38 }
  0xbf   : > { %2432 = vmatprep.subr.mxu1 %v2006_v39  ;;  %2395 = vmatpush3.msra.mxu0 %v1910_v42 }
  0xc0   : > { %2433 = vmatpush3.msra.mxu1 %v1974_v43  ;;  %2396 = vmatprep.subr.mxu0 %v1939_v44 }
  0xc1   : > { %2434 = vmatprep.subr.mxu1 %v2003_v45  ;;  %2397 = vmatpush3.msra.mxu0 %v1907_v46 }
  0xc2   : > { %2435 = vmatpush3.msra.mxu1 %v1971_v47  ;;  %2398 = vmatprep.subr.mxu0 %v1938_v50 }
  0xc3   : > { %2436 = vmatprep.subr.mxu1 %v2002_v51  ;;  %2399 = vmatpush3.msra.mxu0 %v1906_v54 }
  0xc4   : > { %2437 = vmatpush3.msra.mxu1 %v1970_v55  ;;  %2400 = vmatprep.subr.mxu0 %v1935_v56 }
  0xc5   : > { %2438 = vmatprep.subr.mxu1 %v1999_v57  ;;  %2401 = vmatpush3.msra.mxu0 %v1903_v58 }
  0xc6   : > { %2439 = vmatpush3.msra.mxu1 %v1967_v59  ;;  %2402 = vmatprep.subr.mxu0 %v1934_v62 }
  0xc7   : > { %2440 = vmatprep.subr.mxu1 %v1998_v63  ;;  %2403 = vmatpush3.msra.mxu0 %v1902_v2 }
  0xc8   : > { %2441 = vmatpush3.msra.mxu1 %v1966_v3  ;;  %2404 = vmatprep.subr.mxu0 %v1931_v4 }
  0xc9   : > { %2442 = vmatprep.subr.mxu1 %v1995_v5  ;;  %2405 = vmatpush3.msra.mxu0 %v1899_v6 }
  0xca   : > { %2443 = vmatpush3.msra.mxu1 %v1963_v7  ;;  %2406 = vmatprep.subr.mxu0 %v1930_v10 }
  0xcb   : > { %2444 = vmatprep.subr.mxu1 %v1994_v11  ;;  %2407 = vmatpush3.msra.mxu0 %v1898_v14 }
  0xcc   : > { %2445 = vmatpush3.msra.mxu1 %v1962_v15  ;;  %2408 = vmatprep.subr.mxu0 %v1927_v16 }
  0xcd   : > { %2446 = vmatprep.subr.mxu1 %v1991_v17  ;;  %2409 = vmatpush3.msra.mxu0 %v1895_v18 }
  0xce   : > { %2447 = vmatpush3.msra.mxu1 %v1959_v19  ;;  %2410 = vmatprep.subr.mxu0 %v1926_v20 }
  0xcf   : > { %2448 = vmatprep.subr.mxu1 %v1990_v21  ;;  %2411 = vmatpush3.msra.mxu0 %v1894_v22 }
  0xd0   : > { %1270 = vmatprep.mubr.f32.mxu0 %v225_v23  ;;  %2449 = vmatpush3.msra.mxu1 %v1958_v24 }
  0xd1   : > { %1345 = vmatprep.mubr.f32.mxu1 %v227_v25  ;;  %1271 = vmatmul.mubr.f32.vlgmr.msra.gmra.mxu0 %v224_v26 }
  0xd2   : > { %1346 = vmatmul.mubr.f32.vlgmr.msra.gmra.mxu1 %v226_v27  ;;  %1275 = vmatprep.mubr.f32.mxu0 %v241_v28 }
  0xd3   : > { %1350 = vmatprep.mubr.f32.mxu1 %v243_v29 }
  0xd5   : > { %1276 = vmatmul.mubr.f32.gmra.mxu0 %v240_v30 }
  0xd6   : > { %1351 = vmatmul.mubr.f32.gmra.mxu1 %v242_v31 }
 0x125   : > { %v2184_v32 = vpop.f32.mrf.mxu0 }
 0x126   : > { %v2222_v33 = vpop.f32.mrf.mxu1 }
 0x127   : > { %v2185_v34 = vpop.f32.mrf.mxu0 }
 0x128   : > { %v2223_v36 = vpop.f32.mrf.mxu1  ;;  %v2186_v51 = vadd.f32 %v2185_v34, %v2184_v32 }
 0x129   : > { %v2224_v52 = vadd.f32 %v2223_v36, %v2222_v33 }
 0x12b   : > { %v898_v58 = vadd.f32 %v2224_v52, %v2186_v51 }
 0x142   : > { %v2187_v35 = vpop.f32.mrf.mxu0 }
 0x143   : > { %v2225_v37 = vpop.f32.mrf.mxu1 }
 0x144   : > { %v2188_v38 = vpop.f32.mrf.mxu0 }
 0x145   : > { %v2226_v39 = vpop.f32.mrf.mxu1  ;;  %v2189_v54 = vadd.f32 %v2188_v38, %v2187_v35 }
 0x146   : > { %v2227_v55 = vadd.f32 %v2226_v39, %v2225_v37 }
 0x148   : > { %v903_v61 = vadd.f32 %v2227_v55, %v2189_v54 }
 0x149   : > { %v2260_v40 = vpop.f32.mrf.mxu0 }
 0x14b   : > { %v2298_v41 = vpop.f32.mrf.mxu1  ;;  %v2261_v42 = vpop.f32.mrf.mxu0 }
 0x14c   : > { %v2262_v56 = vadd.f32 %v2261_v42, %v2260_v40 }
 0x14d   : > { %v2299_v43 = vpop.f32.mrf.mxu1 }
 0x14e   : > { %v973_v62 = vadd.f32 %v2262_v56, %v898_v58  ;;  %v2300_v63 = vadd.f32 %v2299_v43, %v2298_v41 }
 0x14f   : > { %v2263_v44 = vpop.f32.mrf.mxu0 }
 0x150   : > { %v1048_v5 = vadd.f32 %v2300_v63, %v973_v62 }
 0x151   : > { %v2264_v46 = vpop.f32.mrf.mxu0 }
 0x152   : > { %v2301_v45 = vpop.f32.mrf.mxu1  ;;  %v2265_v59 = vadd.f32 %v2264_v46, %v2263_v44 }
 0x154   : > { %v2302_v47 = vpop.f32.mrf.mxu1  ;;  %v978_v1 = vadd.f32 %v2265_v59, %v903_v61 }
 0x155   : > { %v2303_v2 = vadd.f32 %v2302_v47, %v2301_v45 }
 0x157   : > { %v1053_v9 = vadd.f32 %v2303_v2, %v978_v1 }
 0x16d   : > { %v2336_v48 = vpop.f32.mrf.mxu0 }
 0x16f   : > { %v2374_v49 = vpop.f32.mrf.mxu1  ;;  %v2337_v50 = vpop.f32.mrf.mxu0 }
 0x170   : > { %v2338_v3 = vadd.f32 %v2337_v50, %v2336_v48 }
 0x171   : > { %v2375_v53 = vpop.f32.mrf.mxu1 }
 0x172   : > { %v1123_v10 = vadd.f32 %v2338_v3, %v1048_v5  ;;  %v2376_v11 = vadd.f32 %v2375_v53, %v2374_v49 }
 0x173   : > { %v2339_v57 = vpop.f32.mrf.mxu0 }
 0x174   : > { %v1198_v19 = vadd.f32 %v2376_v11, %v1123_v10 }
 0x175   : > { %v2340_v0 = vpop.f32.mrf.mxu0 }
 0x176   : > { %v2377_v60 = vpop.f32.mrf.mxu1  ;;  %v2341_v6 = vadd.f32 %v2340_v0, %v2339_v57 }
 0x178   : > { %v2378_v4 = vpop.f32.mrf.mxu1  ;;  %v1128_v14 = vadd.f32 %v2341_v6, %v1053_v9 }
 0x179   : > { %v2379_v15 = vadd.f32 %v2378_v4, %v2377_v60 }
 0x17b   : > { %v1203_v22 = vadd.f32 %v2379_v15, %v1128_v14 }
 0x191   : > { %v2412_v7 = vpop.f32.mrf.mxu0 }
 0x192   : > { %v2450_v8 = vpop.f32.mrf.mxu1 }
 0x193   : > { %v2413_v12 = vpop.f32.mrf.mxu0 }
 0x194   : > { %v2451_v13 = vpop.f32.mrf.mxu1  ;;  %v2414_v16 = vadd.f32 %v2413_v12, %v2412_v7 }
 0x195   : > { %v2415_v17 = vpop.f32.mrf.mxu0  ;;  %v2452_v25 = vadd.f32 %v2451_v13, %v2450_v8 }
 0x196   : > { %v2453_v18 = vpop.f32.mrf.mxu1  ;;  %v1273_v23 = vadd.f32 %v2414_v16, %v1198_v19 }
 0x197   : > { %v2416_v20 = vpop.f32.mrf.mxu0 }
 0x198   : > { %v2454_v21 = vpop.f32.mrf.mxu1  ;;  %v2417_v24 = vadd.f32 %v2416_v20, %v2415_v17  ;;  %v1348_v28 = vadd.f32 %v2452_v25, %v1273_v23 }
 0x199   : > { %v2455_v27 = vadd.f32 %v2454_v21, %v2453_v18 }
 0x19a   : > { %v1278_v26 = vadd.f32 %v2417_v24, %v1203_v22 }
 0x19c   : > { %v1353_v29 = vadd.f32 %v2455_v27, %v1278_v26 }
 0x19e   : > { %v2023_v30 = vpack.c.bf16 %v1353_v29, %v1348_v28 }
 0x1a0   : > { %2024 = vst [vmem:[%s199_s21] sm:$0xff] %v2023_v30  }
 0x1a1   : > { %2602 = shalt.err (!%p2599_p5)
}
 0x1a2   : > { %s2603_s6 = scalar_lea.hbm %s2961_s18, 128  ;;  %s2607_s16 = scalar_lea.hbm %s3013_s2, 256 }
 0x1a3   : > { %p2604_p7 = scmp.ne.s32.totalorder %s2961_s18, %s2603_s6  ;;  %p2608_p9 = scmp.lt.s32.totalorder %s2961_s18, %s3013_s2 }
 0x1a4   : > { %p2609_p11 = scmp.lt.s32.totalorder %s2607_s16, %s2603_s6 }
 0x1a5   : > { %p2605_p6 = pnand %p2604_p7, %p2786_p13 }
 0x1a6   : > { %p2610_p10 = por %p2609_p11, %p2608_p9 }
 0x1a7   : > { %p2606_p4 = pneg %p2605_p6 }
 0x1a9   : > { %p2611_p1 = pnand %p2610_p10, %p2606_p4 }
 0x1ab   : > { %2614 = shalt.err (!%p2611_p1)
}
 0x1ac   : > { %s2682_s17 = smov 64   ;;  %s2683_s19 = smov 4  }
 0x1ad   : > { %2462 = dma.vmem_to_hbm [thread:$0]  (%p2786_p13), %s2963_s24, 128, %s2961_s18, %s1376_s28, %s2682_s17, %s2682_s17, %s2683_s19  }
 0x1ae PF: > { %s1404_s21 = sand.u32 1, %s2653_s9   ;;  %p3025_p8 = scmp.ne.s32.totalorder %s3018_s20, 0 }
 0x1af   : > { %p3026_p12 = scmp.ge.s32.totalorder %s2673_s14, 2  ;;  %s1405_s26 = scalar_lea.sflag [#allocation5], %s1404_s21 }
 0x1b1   : > { %p2473_p0 = pnand %p3026_p12, %p3025_p8 }
 0x1b3   : > { %p2474_p2 = pneg %p2473_p0 }
 0x1b5   : > { %2648 = dma.done.wait (%p2474_p2), %s1405_s26, 128  }
 0x1b6   : > { %2650 = vsyncadd (%p2474_p2), %s1405_s26, 4294967168  ;;  %s19_s14 = sadd.s32 1, %s2673_s14   ;;  %s3027_s9 = smov %s2657_s10 }
 0x1b7   : > { %p16_p3 = scmp.ge.s32.totalorder %s19_s14, 4   ;;  %s3028_s10 = smov %s2661_s11 }
 0x1b8   : > { %s3029_s11 = smov %s2795_s15  ;;  %s3030_s12 = smov %s2669_s13 }
 0x1b9   : > { %s3031_s13 = smov %s3033_s25  ;;  %18 = sbr.rel (!%p16_p3) target bundleno = 7 (0x7), region = 87 }
 0x1be   :  { %1410 = vsyncpa [#allocation4], 1 }
 0x1bf   :  { %1412 = vsyncpa [#allocation4 + $0x1], 1 }
 0x1c0   :  { %1413 = vsyncpa [#allocation7], 1 }
 0x1c1   :  { %1415 = vsyncpa [#allocation7 + $0x1], 1 }
 0x1c2   :  { %1416 = vsyncpa [#allocation5], 1 }
 0x1c3   :  { %1418 = vsyncpa [#allocation5 + $0x1], 1 }

</bundles_post_ra>
